<compile_context>
chip_gen: v7x
topology: tpu7x:2x2x1
jax: 0.10.0
libtpu: 0.0.40
codegen_flags: <defaults>
</compile_context>

<pallas_src>
import functools

import jax
import jax.numpy as jnp
from jax.experimental import pallas as pl
from jax.experimental.pallas import tpu as pltpu

# ---- layer dims of DNNModel ------------------------------------------------
D_IN, H1, H2, D_OUT = 2, 7, 6, 1

# offsets into the flattened parameter vector (row-major [in, out] weights)
_W1_OFF = 0
_B1_OFF = _W1_OFF + D_IN * H1
_W2_OFF = _B1_OFF + H1
_B2_OFF = _W2_OFF + H1 * H2
_W3_OFF = _B2_OFF + H2
_B3_OFF = _W3_OFF + H2 * D_OUT
N_PARAMS = _B3_OFF + D_OUT          # 76 scalars total

_SUB = 8                            # sublane rows used for the batch layout


def _round_up(x, m):
    return (x + m - 1) // m * m


def dnn_kernel(p_ref, x_ref, o_ref):
    """p_ref: SMEM f32[76]; x_ref: VMEM (2, 8, T); o_ref: VMEM (8, T).

    Batch elements occupy (sublane, lane); the three layers are unrolled into
    scalar-broadcast MACs on the VPU (feature dims are far too small for the
    MXU).  Sigmoid uses EUP exp + approximate reciprocal.
    """
    x0 = x_ref[0]                   # (8, T): feature-0 values of this tile
    x1 = x_ref[1]                   # (8, T): feature-1 values

    # fc1 + ReLU (2 -> 7)
    h1 = []
    for j in range(H1):
        z = (x0 * p_ref[_W1_OFF + 0 * H1 + j]
             + x1 * p_ref[_W1_OFF + 1 * H1 + j]
             + p_ref[_B1_OFF + j])
        h1.append(jnp.maximum(z, 0.0))

    # fc2 + ReLU (7 -> 6)
    h2 = []
    for j in range(H2):
        z = h1[0] * p_ref[_W2_OFF + 0 * H2 + j]
        for k in range(1, H1):
            z = z + h1[k] * p_ref[_W2_OFF + k * H2 + j]
        z = z + p_ref[_B2_OFF + j]
        h2.append(jnp.maximum(z, 0.0))

    # fc3 + Sigmoid (6 -> 1)
    z = h2[0] * p_ref[_W3_OFF + 0]
    for k in range(1, H2):
        z = z + h2[k] * p_ref[_W3_OFF + k]
    z = z + p_ref[_B3_OFF]

    # sigmoid: exp and reciprocal both go to the (otherwise idle) EUP slot
    o_ref[...] = pl.reciprocal(1.0 + jnp.exp(-z), approx=True)


def flatten_params(params):
    return jnp.concatenate([
        params["w1"].reshape(-1), params["b1"].reshape(-1),
        params["w2"].reshape(-1), params["b2"].reshape(-1),
        params["w3"].reshape(-1), params["b3"].reshape(-1),
    ]).astype(jnp.float32)


@functools.partial(jax.jit, static_argnames=("block_lanes",))
def dnn_forward(x, params, *, block_lanes=8192):
    """x: (B, 2) float32 -> (B, 1) float32.

    block_lanes: lane width T of one batch tile (multiple of 128).  Each grid
    step processes 8*T batch elements; x tile = 64*T bytes, out tile = 32*T
    bytes, so the default (T=8192) keeps the double-buffered footprint well
    under 2 MiB of VMEM on all TPU generations while giving a many-step grid
    for large batches.
    """
    assert block_lanes % 128 == 0
    B = x.shape[0]
    assert x.shape[1] == D_IN

    # Lane-dense layout: pad batch to Bp = 8 * L (L a multiple of the tile T),
    # put batch on the last two axes, features leading.
    l_needed = max(-(-B // _SUB), 128)
    T = min(block_lanes, _round_up(l_needed, 128))
    L = _round_up(l_needed, T)
    Bp = _SUB * L

    x_pad = jnp.pad(x.astype(jnp.float32), ((0, Bp - B), (0, 0)))
    x_t = x_pad.T.reshape(D_IN, _SUB, L)           # (2, 8, L); batch b -> (b//L, b%L)

    p_flat = flatten_params(params)                # (76,) f32 -> SMEM

    out = pl.pallas_call(
        dnn_kernel,
        out_shape=jax.ShapeDtypeStruct((_SUB, L), jnp.float32),
        grid_spec=pltpu.PrefetchScalarGridSpec(
            num_scalar_prefetch=0,
            grid=(L // T,),
            in_specs=[
                pl.BlockSpec(memory_space=pltpu.MemorySpace.SMEM),   # all params
                pl.BlockSpec((D_IN, _SUB, T), lambda i: (0, 0, i)),  # x batch tile
            ],
            out_specs=pl.BlockSpec((_SUB, T), lambda i: (0, i)),     # lane-dense out
        ),
        compiler_params=pltpu.CompilerParams(
            dimension_semantics=("parallel",),
        ),
        cost_estimate=pl.CostEstimate(
            flops=2 * (D_IN * H1 + H1 * H2 + H2 * D_OUT) * Bp,
            transcendentals=Bp,
            bytes_accessed=(D_IN + D_OUT) * 4 * Bp + N_PARAMS * 4,
        ),
    )(p_flat, x_t)

    # invert the layout: flat index sub*L + lane == original padded batch index
    return out.reshape(Bp, 1)[:B]


def init_params(key):
    """Deterministic init mimicking nn.Linear's U(-1/sqrt(in), 1/sqrt(in))."""
    def linear(key, fan_in, fan_out):
        kw, kb = jax.random.split(key)
        bound = 1.0 / jnp.sqrt(fan_in)
        w = jax.random.uniform(kw, (fan_in, fan_out), jnp.float32, -bound, bound)
        b = jax.random.uniform(kb, (fan_out,), jnp.float32, -bound, bound)
        return w, b

    k1, k2, k3 = jax.random.split(key, 3)
    w1, b1 = linear(k1, D_IN, H1)
    w2, b2 = linear(k2, H1, H2)
    w3, b3 = linear(k3, H2, D_OUT)
    return {"w1": w1, "b1": b1, "w2": w2, "b2": b2, "w3": w3, "b3": b3}


def dnn_forward_ref(x, params):
    h1 = jax.nn.relu(x @ params["w1"] + params["b1"])
    h2 = jax.nn.relu(h1 @ params["w2"] + params["b2"])
    return jax.nn.sigmoid(h2 @ params["w3"] + params["b3"])


if __name__ == "__main__":
    key = jax.random.PRNGKey(0)
    kx, kp = jax.random.split(key)
    params = init_params(kp)

    # small batch, single tile
    x_small = jax.random.normal(kx, (8, D_IN), dtype=jnp.float32)
    y_small = jax.block_until_ready(dnn_forward(x_small, params))
    y_small_ref = dnn_forward_ref(x_small, params)
    assert y_small.shape == (8, 1)
    assert jnp.allclose(y_small, y_small_ref, atol=2e-3, rtol=2e-3)

    # multi-tile grid + non-multiple-of-8 batch (exercises padding & index_map)
    x_big = jax.random.normal(kx, (2049, D_IN), dtype=jnp.float32)
    y_big = jax.block_until_ready(dnn_forward(x_big, params, block_lanes=128))
    y_big_ref = dnn_forward_ref(x_big, params)
    assert y_big.shape == (2049, 1)
    assert jnp.allclose(y_big, y_big_ref, atol=2e-3, rtol=2e-3)

    print("KERNEL_OK")
</pallas_src>

<mosaic_0001>
module attributes {stable_mosaic.version = 11 : i64} {
  func.func @dnn_kernel(%arg0: i32, %arg1: memref<76xf32, #tpu.memory_space<smem>>, %arg2: memref<2x8x128xf32, #tpu.memory_space<vmem>>, %arg3: memref<8x128xf32, #tpu.memory_space<vmem>>) attributes {dimension_semantics = [#tpu.dimension_semantics<parallel>], iteration_bounds = array<i64: 1>, scalar_prefetch = 0 : i64, scratch_operands = 0 : i64, tpu.core_type = #tpu.core_type<tc>, window_params = [{transform_indices = @transform_0, window_bounds = array<i64: 76>}, {transform_indices = @transform_1, window_bounds = array<i64: 2, 8, 128>}, {transform_indices = @transform_2, window_bounds = array<i64: 8, 128>}]} {
    %c0 = arith.constant 0 : index
    %c0_0 = arith.constant 0 : index
    %c0_1 = arith.constant 0 : index
    %0 = vector.load %arg2[%c0, %c0_0, %c0_1] : memref<2x8x128xf32, #tpu.memory_space<vmem>>, vector<1x8x128xf32>
    %1 = vector.shape_cast %0 : vector<1x8x128xf32> to vector<8x128xf32>
    %c1 = arith.constant 1 : index
    %c0_2 = arith.constant 0 : index
    %c0_3 = arith.constant 0 : index
    %2 = vector.load %arg2[%c1, %c0_2, %c0_3] : memref<2x8x128xf32, #tpu.memory_space<vmem>>, vector<1x8x128xf32>
    %3 = vector.shape_cast %2 : vector<1x8x128xf32> to vector<8x128xf32>
    %c0_4 = arith.constant 0 : index
    %4 = memref.load %arg1[%c0_4] : memref<76xf32, #tpu.memory_space<smem>>
    %5 = vector.broadcast %4 : f32 to vector<8x128xf32>
    %6 = arith.mulf %1, %5 : vector<8x128xf32>
    %c7 = arith.constant 7 : index
    %7 = memref.load %arg1[%c7] : memref<76xf32, #tpu.memory_space<smem>>
    %8 = vector.broadcast %7 : f32 to vector<8x128xf32>
    %9 = arith.mulf %3, %8 : vector<8x128xf32>
    %10 = arith.addf %6, %9 : vector<8x128xf32>
    %c14 = arith.constant 14 : index
    %11 = memref.load %arg1[%c14] : memref<76xf32, #tpu.memory_space<smem>>
    %12 = vector.broadcast %11 : f32 to vector<8x128xf32>
    %13 = arith.addf %10, %12 : vector<8x128xf32>
    %cst = arith.constant 0.000000e+00 : f32
    %14 = vector.broadcast %cst : f32 to vector<8x128xf32>
    %15 = arith.maximumf %13, %14 : vector<8x128xf32>
    %c1_5 = arith.constant 1 : index
    %16 = memref.load %arg1[%c1_5] : memref<76xf32, #tpu.memory_space<smem>>
    %17 = vector.broadcast %16 : f32 to vector<8x128xf32>
    %18 = arith.mulf %1, %17 : vector<8x128xf32>
    %c8 = arith.constant 8 : index
    %19 = memref.load %arg1[%c8] : memref<76xf32, #tpu.memory_space<smem>>
    %20 = vector.broadcast %19 : f32 to vector<8x128xf32>
    %21 = arith.mulf %3, %20 : vector<8x128xf32>
    %22 = arith.addf %18, %21 : vector<8x128xf32>
    %c15 = arith.constant 15 : index
    %23 = memref.load %arg1[%c15] : memref<76xf32, #tpu.memory_space<smem>>
    %24 = vector.broadcast %23 : f32 to vector<8x128xf32>
    %25 = arith.addf %22, %24 : vector<8x128xf32>
    %cst_6 = arith.constant 0.000000e+00 : f32
    %26 = vector.broadcast %cst_6 : f32 to vector<8x128xf32>
    %27 = arith.maximumf %25, %26 : vector<8x128xf32>
    %c2 = arith.constant 2 : index
    %28 = memref.load %arg1[%c2] : memref<76xf32, #tpu.memory_space<smem>>
    %29 = vector.broadcast %28 : f32 to vector<8x128xf32>
    %30 = arith.mulf %1, %29 : vector<8x128xf32>
    %c9 = arith.constant 9 : index
    %31 = memref.load %arg1[%c9] : memref<76xf32, #tpu.memory_space<smem>>
    %32 = vector.broadcast %31 : f32 to vector<8x128xf32>
    %33 = arith.mulf %3, %32 : vector<8x128xf32>
    %34 = arith.addf %30, %33 : vector<8x128xf32>
    %c16 = arith.constant 16 : index
    %35 = memref.load %arg1[%c16] : memref<76xf32, #tpu.memory_space<smem>>
    %36 = vector.broadcast %35 : f32 to vector<8x128xf32>
    %37 = arith.addf %34, %36 : vector<8x128xf32>
    %cst_7 = arith.constant 0.000000e+00 : f32
    %38 = vector.broadcast %cst_7 : f32 to vector<8x128xf32>
    %39 = arith.maximumf %37, %38 : vector<8x128xf32>
    %c3 = arith.constant 3 : index
    %40 = memref.load %arg1[%c3] : memref<76xf32, #tpu.memory_space<smem>>
    %41 = vector.broadcast %40 : f32 to vector<8x128xf32>
    %42 = arith.mulf %1, %41 : vector<8x128xf32>
    %c10 = arith.constant 10 : index
    %43 = memref.load %arg1[%c10] : memref<76xf32, #tpu.memory_space<smem>>
    %44 = vector.broadcast %43 : f32 to vector<8x128xf32>
    %45 = arith.mulf %3, %44 : vector<8x128xf32>
    %46 = arith.addf %42, %45 : vector<8x128xf32>
    %c17 = arith.constant 17 : index
    %47 = memref.load %arg1[%c17] : memref<76xf32, #tpu.memory_space<smem>>
    %48 = vector.broadcast %47 : f32 to vector<8x128xf32>
    %49 = arith.addf %46, %48 : vector<8x128xf32>
    %cst_8 = arith.constant 0.000000e+00 : f32
    %50 = vector.broadcast %cst_8 : f32 to vector<8x128xf32>
    %51 = arith.maximumf %49, %50 : vector<8x128xf32>
    %c4 = arith.constant 4 : index
    %52 = memref.load %arg1[%c4] : memref<76xf32, #tpu.memory_space<smem>>
    %53 = vector.broadcast %52 : f32 to vector<8x128xf32>
    %54 = arith.mulf %1, %53 : vector<8x128xf32>
    %c11 = arith.constant 11 : index
    %55 = memref.load %arg1[%c11] : memref<76xf32, #tpu.memory_space<smem>>
    %56 = vector.broadcast %55 : f32 to vector<8x128xf32>
    %57 = arith.mulf %3, %56 : vector<8x128xf32>
    %58 = arith.addf %54, %57 : vector<8x128xf32>
    %c18 = arith.constant 18 : index
    %59 = memref.load %arg1[%c18] : memref<76xf32, #tpu.memory_space<smem>>
    %60 = vector.broadcast %59 : f32 to vector<8x128xf32>
    %61 = arith.addf %58, %60 : vector<8x128xf32>
    %cst_9 = arith.constant 0.000000e+00 : f32
    %62 = vector.broadcast %cst_9 : f32 to vector<8x128xf32>
    %63 = arith.maximumf %61, %62 : vector<8x128xf32>
    %c5 = arith.constant 5 : index
    %64 = memref.load %arg1[%c5] : memref<76xf32, #tpu.memory_space<smem>>
    %65 = vector.broadcast %64 : f32 to vector<8x128xf32>
    %66 = arith.mulf %1, %65 : vector<8x128xf32>
    %c12 = arith.constant 12 : index
    %67 = memref.load %arg1[%c12] : memref<76xf32, #tpu.memory_space<smem>>
    %68 = vector.broadcast %67 : f32 to vector<8x128xf32>
    %69 = arith.mulf %3, %68 : vector<8x128xf32>
    %70 = arith.addf %66, %69 : vector<8x128xf32>
    %c19 = arith.constant 19 : index
    %71 = memref.load %arg1[%c19] : memref<76xf32, #tpu.memory_space<smem>>
    %72 = vector.broadcast %71 : f32 to vector<8x128xf32>
    %73 = arith.addf %70, %72 : vector<8x128xf32>
    %cst_10 = arith.constant 0.000000e+00 : f32
    %74 = vector.broadcast %cst_10 : f32 to vector<8x128xf32>
    %75 = arith.maximumf %73, %74 : vector<8x128xf32>
    %c6 = arith.constant 6 : index
    %76 = memref.load %arg1[%c6] : memref<76xf32, #tpu.memory_space<smem>>
    %77 = vector.broadcast %76 : f32 to vector<8x128xf32>
    %78 = arith.mulf %1, %77 : vector<8x128xf32>
    %c13 = arith.constant 13 : index
    %79 = memref.load %arg1[%c13] : memref<76xf32, #tpu.memory_space<smem>>
    %80 = vector.broadcast %79 : f32 to vector<8x128xf32>
    %81 = arith.mulf %3, %80 : vector<8x128xf32>
    %82 = arith.addf %78, %81 : vector<8x128xf32>
    %c20 = arith.constant 20 : index
    %83 = memref.load %arg1[%c20] : memref<76xf32, #tpu.memory_space<smem>>
    %84 = vector.broadcast %83 : f32 to vector<8x128xf32>
    %85 = arith.addf %82, %84 : vector<8x128xf32>
    %cst_11 = arith.constant 0.000000e+00 : f32
    %86 = vector.broadcast %cst_11 : f32 to vector<8x128xf32>
    %87 = arith.maximumf %85, %86 : vector<8x128xf32>
    %c21 = arith.constant 21 : index
    %88 = memref.load %arg1[%c21] : memref<76xf32, #tpu.memory_space<smem>>
    %89 = vector.broadcast %88 : f32 to vector<8x128xf32>
    %90 = arith.mulf %15, %89 : vector<8x128xf32>
    %c27 = arith.constant 27 : index
    %91 = memref.load %arg1[%c27] : memref<76xf32, #tpu.memory_space<smem>>
    %92 = vector.broadcast %91 : f32 to vector<8x128xf32>
    %93 = arith.mulf %27, %92 : vector<8x128xf32>
    %94 = arith.addf %90, %93 : vector<8x128xf32>
    %c33 = arith.constant 33 : index
    %95 = memref.load %arg1[%c33] : memref<76xf32, #tpu.memory_space<smem>>
    %96 = vector.broadcast %95 : f32 to vector<8x128xf32>
    %97 = arith.mulf %39, %96 : vector<8x128xf32>
    %98 = arith.addf %94, %97 : vector<8x128xf32>
    %c39 = arith.constant 39 : index
    %99 = memref.load %arg1[%c39] : memref<76xf32, #tpu.memory_space<smem>>
    %100 = vector.broadcast %99 : f32 to vector<8x128xf32>
    %101 = arith.mulf %51, %100 : vector<8x128xf32>
    %102 = arith.addf %98, %101 : vector<8x128xf32>
    %c45 = arith.constant 45 : index
    %103 = memref.load %arg1[%c45] : memref<76xf32, #tpu.memory_space<smem>>
    %104 = vector.broadcast %103 : f32 to vector<8x128xf32>
    %105 = arith.mulf %63, %104 : vector<8x128xf32>
    %106 = arith.addf %102, %105 : vector<8x128xf32>
    %c51 = arith.constant 51 : index
    %107 = memref.load %arg1[%c51] : memref<76xf32, #tpu.memory_space<smem>>
    %108 = vector.broadcast %107 : f32 to vector<8x128xf32>
    %109 = arith.mulf %75, %108 : vector<8x128xf32>
    %110 = arith.addf %106, %109 : vector<8x128xf32>
    %c57 = arith.constant 57 : index
    %111 = memref.load %arg1[%c57] : memref<76xf32, #tpu.memory_space<smem>>
    %112 = vector.broadcast %111 : f32 to vector<8x128xf32>
    %113 = arith.mulf %87, %112 : vector<8x128xf32>
    %114 = arith.addf %110, %113 : vector<8x128xf32>
    %c63 = arith.constant 63 : index
    %115 = memref.load %arg1[%c63] : memref<76xf32, #tpu.memory_space<smem>>
    %116 = vector.broadcast %115 : f32 to vector<8x128xf32>
    %117 = arith.addf %114, %116 : vector<8x128xf32>
    %cst_12 = arith.constant 0.000000e+00 : f32
    %118 = vector.broadcast %cst_12 : f32 to vector<8x128xf32>
    %119 = arith.maximumf %117, %118 : vector<8x128xf32>
    %c22 = arith.constant 22 : index
    %120 = memref.load %arg1[%c22] : memref<76xf32, #tpu.memory_space<smem>>
    %121 = vector.broadcast %120 : f32 to vector<8x128xf32>
    %122 = arith.mulf %15, %121 : vector<8x128xf32>
    %c28 = arith.constant 28 : index
    %123 = memref.load %arg1[%c28] : memref<76xf32, #tpu.memory_space<smem>>
    %124 = vector.broadcast %123 : f32 to vector<8x128xf32>
    %125 = arith.mulf %27, %124 : vector<8x128xf32>
    %126 = arith.addf %122, %125 : vector<8x128xf32>
    %c34 = arith.constant 34 : index
    %127 = memref.load %arg1[%c34] : memref<76xf32, #tpu.memory_space<smem>>
    %128 = vector.broadcast %127 : f32 to vector<8x128xf32>
    %129 = arith.mulf %39, %128 : vector<8x128xf32>
    %130 = arith.addf %126, %129 : vector<8x128xf32>
    %c40 = arith.constant 40 : index
    %131 = memref.load %arg1[%c40] : memref<76xf32, #tpu.memory_space<smem>>
    %132 = vector.broadcast %131 : f32 to vector<8x128xf32>
    %133 = arith.mulf %51, %132 : vector<8x128xf32>
    %134 = arith.addf %130, %133 : vector<8x128xf32>
    %c46 = arith.constant 46 : index
    %135 = memref.load %arg1[%c46] : memref<76xf32, #tpu.memory_space<smem>>
    %136 = vector.broadcast %135 : f32 to vector<8x128xf32>
    %137 = arith.mulf %63, %136 : vector<8x128xf32>
    %138 = arith.addf %134, %137 : vector<8x128xf32>
    %c52 = arith.constant 52 : index
    %139 = memref.load %arg1[%c52] : memref<76xf32, #tpu.memory_space<smem>>
    %140 = vector.broadcast %139 : f32 to vector<8x128xf32>
    %141 = arith.mulf %75, %140 : vector<8x128xf32>
    %142 = arith.addf %138, %141 : vector<8x128xf32>
    %c58 = arith.constant 58 : index
    %143 = memref.load %arg1[%c58] : memref<76xf32, #tpu.memory_space<smem>>
    %144 = vector.broadcast %143 : f32 to vector<8x128xf32>
    %145 = arith.mulf %87, %144 : vector<8x128xf32>
    %146 = arith.addf %142, %145 : vector<8x128xf32>
    %c64 = arith.constant 64 : index
    %147 = memref.load %arg1[%c64] : memref<76xf32, #tpu.memory_space<smem>>
    %148 = vector.broadcast %147 : f32 to vector<8x128xf32>
    %149 = arith.addf %146, %148 : vector<8x128xf32>
    %cst_13 = arith.constant 0.000000e+00 : f32
    %150 = vector.broadcast %cst_13 : f32 to vector<8x128xf32>
    %151 = arith.maximumf %149, %150 : vector<8x128xf32>
    %c23 = arith.constant 23 : index
    %152 = memref.load %arg1[%c23] : memref<76xf32, #tpu.memory_space<smem>>
    %153 = vector.broadcast %152 : f32 to vector<8x128xf32>
    %154 = arith.mulf %15, %153 : vector<8x128xf32>
    %c29 = arith.constant 29 : index
    %155 = memref.load %arg1[%c29] : memref<76xf32, #tpu.memory_space<smem>>
    %156 = vector.broadcast %155 : f32 to vector<8x128xf32>
    %157 = arith.mulf %27, %156 : vector<8x128xf32>
    %158 = arith.addf %154, %157 : vector<8x128xf32>
    %c35 = arith.constant 35 : index
    %159 = memref.load %arg1[%c35] : memref<76xf32, #tpu.memory_space<smem>>
    %160 = vector.broadcast %159 : f32 to vector<8x128xf32>
    %161 = arith.mulf %39, %160 : vector<8x128xf32>
    %162 = arith.addf %158, %161 : vector<8x128xf32>
    %c41 = arith.constant 41 : index
    %163 = memref.load %arg1[%c41] : memref<76xf32, #tpu.memory_space<smem>>
    %164 = vector.broadcast %163 : f32 to vector<8x128xf32>
    %165 = arith.mulf %51, %164 : vector<8x128xf32>
    %166 = arith.addf %162, %165 : vector<8x128xf32>
    %c47 = arith.constant 47 : index
    %167 = memref.load %arg1[%c47] : memref<76xf32, #tpu.memory_space<smem>>
    %168 = vector.broadcast %167 : f32 to vector<8x128xf32>
    %169 = arith.mulf %63, %168 : vector<8x128xf32>
    %170 = arith.addf %166, %169 : vector<8x128xf32>
    %c53 = arith.constant 53 : index
    %171 = memref.load %arg1[%c53] : memref<76xf32, #tpu.memory_space<smem>>
    %172 = vector.broadcast %171 : f32 to vector<8x128xf32>
    %173 = arith.mulf %75, %172 : vector<8x128xf32>
    %174 = arith.addf %170, %173 : vector<8x128xf32>
    %c59 = arith.constant 59 : index
    %175 = memref.load %arg1[%c59] : memref<76xf32, #tpu.memory_space<smem>>
    %176 = vector.broadcast %175 : f32 to vector<8x128xf32>
    %177 = arith.mulf %87, %176 : vector<8x128xf32>
    %178 = arith.addf %174, %177 : vector<8x128xf32>
    %c65 = arith.constant 65 : index
    %179 = memref.load %arg1[%c65] : memref<76xf32, #tpu.memory_space<smem>>
    %180 = vector.broadcast %179 : f32 to vector<8x128xf32>
    %181 = arith.addf %178, %180 : vector<8x128xf32>
    %cst_14 = arith.constant 0.000000e+00 : f32
    %182 = vector.broadcast %cst_14 : f32 to vector<8x128xf32>
    %183 = arith.maximumf %181, %182 : vector<8x128xf32>
    %c24 = arith.constant 24 : index
    %184 = memref.load %arg1[%c24] : memref<76xf32, #tpu.memory_space<smem>>
    %185 = vector.broadcast %184 : f32 to vector<8x128xf32>
    %186 = arith.mulf %15, %185 : vector<8x128xf32>
    %c30 = arith.constant 30 : index
    %187 = memref.load %arg1[%c30] : memref<76xf32, #tpu.memory_space<smem>>
    %188 = vector.broadcast %187 : f32 to vector<8x128xf32>
    %189 = arith.mulf %27, %188 : vector<8x128xf32>
    %190 = arith.addf %186, %189 : vector<8x128xf32>
    %c36 = arith.constant 36 : index
    %191 = memref.load %arg1[%c36] : memref<76xf32, #tpu.memory_space<smem>>
    %192 = vector.broadcast %191 : f32 to vector<8x128xf32>
    %193 = arith.mulf %39, %192 : vector<8x128xf32>
    %194 = arith.addf %190, %193 : vector<8x128xf32>
    %c42 = arith.constant 42 : index
    %195 = memref.load %arg1[%c42] : memref<76xf32, #tpu.memory_space<smem>>
    %196 = vector.broadcast %195 : f32 to vector<8x128xf32>
    %197 = arith.mulf %51, %196 : vector<8x128xf32>
    %198 = arith.addf %194, %197 : vector<8x128xf32>
    %c48 = arith.constant 48 : index
    %199 = memref.load %arg1[%c48] : memref<76xf32, #tpu.memory_space<smem>>
    %200 = vector.broadcast %199 : f32 to vector<8x128xf32>
    %201 = arith.mulf %63, %200 : vector<8x128xf32>
    %202 = arith.addf %198, %201 : vector<8x128xf32>
    %c54 = arith.constant 54 : index
    %203 = memref.load %arg1[%c54] : memref<76xf32, #tpu.memory_space<smem>>
    %204 = vector.broadcast %203 : f32 to vector<8x128xf32>
    %205 = arith.mulf %75, %204 : vector<8x128xf32>
    %206 = arith.addf %202, %205 : vector<8x128xf32>
    %c60 = arith.constant 60 : index
    %207 = memref.load %arg1[%c60] : memref<76xf32, #tpu.memory_space<smem>>
    %208 = vector.broadcast %207 : f32 to vector<8x128xf32>
    %209 = arith.mulf %87, %208 : vector<8x128xf32>
    %210 = arith.addf %206, %209 : vector<8x128xf32>
    %c66 = arith.constant 66 : index
    %211 = memref.load %arg1[%c66] : memref<76xf32, #tpu.memory_space<smem>>
    %212 = vector.broadcast %211 : f32 to vector<8x128xf32>
    %213 = arith.addf %210, %212 : vector<8x128xf32>
    %cst_15 = arith.constant 0.000000e+00 : f32
    %214 = vector.broadcast %cst_15 : f32 to vector<8x128xf32>
    %215 = arith.maximumf %213, %214 : vector<8x128xf32>
    %c25 = arith.constant 25 : index
    %216 = memref.load %arg1[%c25] : memref<76xf32, #tpu.memory_space<smem>>
    %217 = vector.broadcast %216 : f32 to vector<8x128xf32>
    %218 = arith.mulf %15, %217 : vector<8x128xf32>
    %c31 = arith.constant 31 : index
    %219 = memref.load %arg1[%c31] : memref<76xf32, #tpu.memory_space<smem>>
    %220 = vector.broadcast %219 : f32 to vector<8x128xf32>
    %221 = arith.mulf %27, %220 : vector<8x128xf32>
    %222 = arith.addf %218, %221 : vector<8x128xf32>
    %c37 = arith.constant 37 : index
    %223 = memref.load %arg1[%c37] : memref<76xf32, #tpu.memory_space<smem>>
    %224 = vector.broadcast %223 : f32 to vector<8x128xf32>
    %225 = arith.mulf %39, %224 : vector<8x128xf32>
    %226 = arith.addf %222, %225 : vector<8x128xf32>
    %c43 = arith.constant 43 : index
    %227 = memref.load %arg1[%c43] : memref<76xf32, #tpu.memory_space<smem>>
    %228 = vector.broadcast %227 : f32 to vector<8x128xf32>
    %229 = arith.mulf %51, %228 : vector<8x128xf32>
    %230 = arith.addf %226, %229 : vector<8x128xf32>
    %c49 = arith.constant 49 : index
    %231 = memref.load %arg1[%c49] : memref<76xf32, #tpu.memory_space<smem>>
    %232 = vector.broadcast %231 : f32 to vector<8x128xf32>
    %233 = arith.mulf %63, %232 : vector<8x128xf32>
    %234 = arith.addf %230, %233 : vector<8x128xf32>
    %c55 = arith.constant 55 : index
    %235 = memref.load %arg1[%c55] : memref<76xf32, #tpu.memory_space<smem>>
    %236 = vector.broadcast %235 : f32 to vector<8x128xf32>
    %237 = arith.mulf %75, %236 : vector<8x128xf32>
    %238 = arith.addf %234, %237 : vector<8x128xf32>
    %c61 = arith.constant 61 : index
    %239 = memref.load %arg1[%c61] : memref<76xf32, #tpu.memory_space<smem>>
    %240 = vector.broadcast %239 : f32 to vector<8x128xf32>
    %241 = arith.mulf %87, %240 : vector<8x128xf32>
    %242 = arith.addf %238, %241 : vector<8x128xf32>
    %c67 = arith.constant 67 : index
    %243 = memref.load %arg1[%c67] : memref<76xf32, #tpu.memory_space<smem>>
    %244 = vector.broadcast %243 : f32 to vector<8x128xf32>
    %245 = arith.addf %242, %244 : vector<8x128xf32>
    %cst_16 = arith.constant 0.000000e+00 : f32
    %246 = vector.broadcast %cst_16 : f32 to vector<8x128xf32>
    %247 = arith.maximumf %245, %246 : vector<8x128xf32>
    %c26 = arith.constant 26 : index
    %248 = memref.load %arg1[%c26] : memref<76xf32, #tpu.memory_space<smem>>
    %249 = vector.broadcast %248 : f32 to vector<8x128xf32>
    %250 = arith.mulf %15, %249 : vector<8x128xf32>
    %c32 = arith.constant 32 : index
    %251 = memref.load %arg1[%c32] : memref<76xf32, #tpu.memory_space<smem>>
    %252 = vector.broadcast %251 : f32 to vector<8x128xf32>
    %253 = arith.mulf %27, %252 : vector<8x128xf32>
    %254 = arith.addf %250, %253 : vector<8x128xf32>
    %c38 = arith.constant 38 : index
    %255 = memref.load %arg1[%c38] : memref<76xf32, #tpu.memory_space<smem>>
    %256 = vector.broadcast %255 : f32 to vector<8x128xf32>
    %257 = arith.mulf %39, %256 : vector<8x128xf32>
    %258 = arith.addf %254, %257 : vector<8x128xf32>
    %c44 = arith.constant 44 : index
    %259 = memref.load %arg1[%c44] : memref<76xf32, #tpu.memory_space<smem>>
    %260 = vector.broadcast %259 : f32 to vector<8x128xf32>
    %261 = arith.mulf %51, %260 : vector<8x128xf32>
    %262 = arith.addf %258, %261 : vector<8x128xf32>
    %c50 = arith.constant 50 : index
    %263 = memref.load %arg1[%c50] : memref<76xf32, #tpu.memory_space<smem>>
    %264 = vector.broadcast %263 : f32 to vector<8x128xf32>
    %265 = arith.mulf %63, %264 : vector<8x128xf32>
    %266 = arith.addf %262, %265 : vector<8x128xf32>
    %c56 = arith.constant 56 : index
    %267 = memref.load %arg1[%c56] : memref<76xf32, #tpu.memory_space<smem>>
    %268 = vector.broadcast %267 : f32 to vector<8x128xf32>
    %269 = arith.mulf %75, %268 : vector<8x128xf32>
    %270 = arith.addf %266, %269 : vector<8x128xf32>
    %c62 = arith.constant 62 : index
    %271 = memref.load %arg1[%c62] : memref<76xf32, #tpu.memory_space<smem>>
    %272 = vector.broadcast %271 : f32 to vector<8x128xf32>
    %273 = arith.mulf %87, %272 : vector<8x128xf32>
    %274 = arith.addf %270, %273 : vector<8x128xf32>
    %c68 = arith.constant 68 : index
    %275 = memref.load %arg1[%c68] : memref<76xf32, #tpu.memory_space<smem>>
    %276 = vector.broadcast %275 : f32 to vector<8x128xf32>
    %277 = arith.addf %274, %276 : vector<8x128xf32>
    %cst_17 = arith.constant 0.000000e+00 : f32
    %278 = vector.broadcast %cst_17 : f32 to vector<8x128xf32>
    %279 = arith.maximumf %277, %278 : vector<8x128xf32>
    %c69 = arith.constant 69 : index
    %280 = memref.load %arg1[%c69] : memref<76xf32, #tpu.memory_space<smem>>
    %281 = vector.broadcast %280 : f32 to vector<8x128xf32>
    %282 = arith.mulf %119, %281 : vector<8x128xf32>
    %c70 = arith.constant 70 : index
    %283 = memref.load %arg1[%c70] : memref<76xf32, #tpu.memory_space<smem>>
    %284 = vector.broadcast %283 : f32 to vector<8x128xf32>
    %285 = arith.mulf %151, %284 : vector<8x128xf32>
    %286 = arith.addf %282, %285 : vector<8x128xf32>
    %c71 = arith.constant 71 : index
    %287 = memref.load %arg1[%c71] : memref<76xf32, #tpu.memory_space<smem>>
    %288 = vector.broadcast %287 : f32 to vector<8x128xf32>
    %289 = arith.mulf %183, %288 : vector<8x128xf32>
    %290 = arith.addf %286, %289 : vector<8x128xf32>
    %c72 = arith.constant 72 : index
    %291 = memref.load %arg1[%c72] : memref<76xf32, #tpu.memory_space<smem>>
    %292 = vector.broadcast %291 : f32 to vector<8x128xf32>
    %293 = arith.mulf %215, %292 : vector<8x128xf32>
    %294 = arith.addf %290, %293 : vector<8x128xf32>
    %c73 = arith.constant 73 : index
    %295 = memref.load %arg1[%c73] : memref<76xf32, #tpu.memory_space<smem>>
    %296 = vector.broadcast %295 : f32 to vector<8x128xf32>
    %297 = arith.mulf %247, %296 : vector<8x128xf32>
    %298 = arith.addf %294, %297 : vector<8x128xf32>
    %c74 = arith.constant 74 : index
    %299 = memref.load %arg1[%c74] : memref<76xf32, #tpu.memory_space<smem>>
    %300 = vector.broadcast %299 : f32 to vector<8x128xf32>
    %301 = arith.mulf %279, %300 : vector<8x128xf32>
    %302 = arith.addf %298, %301 : vector<8x128xf32>
    %c75 = arith.constant 75 : index
    %303 = memref.load %arg1[%c75] : memref<76xf32, #tpu.memory_space<smem>>
    %304 = vector.broadcast %303 : f32 to vector<8x128xf32>
    %305 = arith.addf %302, %304 : vector<8x128xf32>
    %cst_18 = arith.constant 0.000000e+00 : f32
    %306 = vector.broadcast %cst_18 : f32 to vector<8x128xf32>
    %307 = arith.subf %306, %305 : vector<8x128xf32>
    %308 = math.exp %307 : vector<8x128xf32>
    %cst_19 = arith.constant 1.000000e+00 : f32
    %309 = vector.broadcast %cst_19 : f32 to vector<8x128xf32>
    %310 = arith.addf %309, %308 : vector<8x128xf32>
    %311 = tpu.reciprocal %310 {approx = true} : vector<8x128xf32> -> vector<8x128xf32>
    %c0_20 = arith.constant 0 : index
    %c0_21 = arith.constant 0 : index
    %312 = vector.load %arg3[%c0_20, %c0_21] : memref<8x128xf32, #tpu.memory_space<vmem>>, vector<8x128xf32>
    tpu.vector_store %arg3[%c0_20, %c0_21], %311 {strides = array<i32>} : memref<8x128xf32, #tpu.memory_space<vmem>>, vector<8x128xf32>,
    return
  }
  func.func @transform_0(%arg0: i32) -> i32 {
    %c0_i32 = arith.constant 0 : i32
    %c0_i32_0 = arith.constant 0 : i32
    return %c0_i32 : i32
  }
  func.func @transform_1(%arg0: i32) -> (i32, i32, i32) {
    %c0_i32 = arith.constant 0 : i32
    %c0_i32_0 = arith.constant 0 : i32
    %c0_i32_1 = arith.constant 0 : i32
    return %c0_i32, %c0_i32_0, %arg0 : i32, i32, i32
  }
  func.func @transform_2(%arg0: i32) -> (i32, i32) {
    %c0_i32 = arith.constant 0 : i32
    %c0_i32_0 = arith.constant 0 : i32
    return %c0_i32, %arg0 : i32, i32
  }
}

</mosaic_0001>

<bundles_post_ra>
// kernel: dnn_forward.1
= control target key start
LH: loop header
LB: loop body
LE: loop exit
PB: predicated region body
PF: predicated region fallthrough
CT: control target
= control target key end

     0   :  { %7 = vsyncpa [#allocation3], 0  ;;  %s733_s0 = inlined_call_operand.vmem [shape: f32[76], index: 0, kind: input, shape index: {}]   ;;  %s734_s1 = inlined_call_operand.vmem [shape: f32[2,8,128], index: 1, kind: input, shape index: {}]   ;;  %s735_s2 = inlined_call_operand.vmem [shape: f32[8,128], index: 2, kind: output, shape index: {}]  }
   0x1   :  { %s14_s11 = sshll.u32 %s733_s0, 4  ;;  %s15_s11 = int_to_ptr.vmem [resolvable:$true] %s14_s11 }
   0x2   :  { %s408_s12 = scalar_lea.vmem %s15_s11, 16  ;;  %p413_p1 = scmp.lt.s32.totalorder %s15_s11, %s15_s11 }
   0x3   :  { %p409_p0 = scmp.ne.s32.totalorder %s15_s11, %s408_s12  ;;  %p414_p2 = scmp.lt.s32.totalorder %s408_s12, %s408_s12 }
   0x5   :  { %p415_p3 = por %p414_p2, %p413_p1 }
   0x7   :  { %p416_p4 = pnand %p415_p3, %p409_p0 }
   0x9   :  { %419 = shalt.err (!%p416_p4)
}
   0xa   :  { %s422_s13 = smov [#allocation2]  }
   0xb   :  { %17 = dma.vmem_to_smem %s15_s11, 16, %s422_s13, [#allocation3]  }
   0xc   :  { %420 = dma.done.wait [#allocation3], 16  }
   0xd   :  { %421 = vsyncadd [#allocation3], 4294967280 }
   0xe   :  { %23 = sfence }
   0xf   :  { %s27_s14 = sld [smem:[#allocation2]]  ;;  %s328_s15 = sld [smem:[#allocation2 + $0x7]]  ;;  %v448_v0 = vld [vmem:[%s734_s1] sm:$0xff]  ;;  %v453_v1 = vld [vmem:[%s734_s1 + $0x8] sm:$0xff] }
  0x10   :  { %s441_s16 = sld [smem:[#allocation2 + $0xe]]  ;;  %s330_s17 = sld [smem:[#allocation2 + $0x1]] }
  0x11   :  { %s331_s18 = sld [smem:[#allocation2 + $0x8]]  ;;  %s443_s0 = sld [smem:[#allocation2 + $0xf]] }
  0x12   :  { %s333_s19 = sld [smem:[#allocation2 + $0x2]]  ;;  %s334_s20 = sld [smem:[#allocation2 + $0x9]] }
  0x13   :  { %s455_s25 = sld [smem:[#allocation2 + $0x10]]  ;;  %s457_s26 = sld [smem:[#allocation2 + $0x3]] }
  0x14   :  { %s459_s27 = sld [smem:[#allocation2 + $0xa]]  ;;  %s461_s28 = sld [smem:[#allocation2 + $0x11]] }
  0x15   :  { %v28_v2 = vstv %s27_s14  ;;  %v31_v3 = vstv %s328_s15  ;;  %s463_s29 = sld [smem:[#allocation2 + $0x4]]  ;;  %s465_s30 = sld [smem:[#allocation2 + $0xb]] }
  0x16   :  { %v29_v4 = vmul.f32 %v28_v2, %v448_v0  ;;  %v32_v5 = vmul.f32 %v453_v1, %v31_v3  ;;  %v39_v6 = vstv %s330_s17  ;;  %s469_s1 = sld [smem:[#allocation2 + $0x12]]  ;;  %s471_s3 = sld [smem:[#allocation2 + $0x5]]  ;;  %v35_v7 = vstv %s441_s16 }
  0x17   :  { %v40_v8 = vmul.f32 %v39_v6, %v448_v0  ;;  %v42_v9 = vstv %s331_s18  ;;  %v46_v10 = vstv %s443_s0  ;;  %s476_s4 = sld [smem:[#allocation2 + $0xc]]  ;;  %s478_s5 = sld [smem:[#allocation2 + $0x13]] }
  0x18   :  { %v33_v11 = vadd.f32 %v32_v5, %v29_v4  ;;  %v43_v12 = vmul.f32 %v453_v1, %v42_v9  ;;  %v50_v13 = vstv %s333_s19  ;;  %v53_v14 = vstv %s334_s20  ;;  %s481_s6 = sld [smem:[#allocation2 + $0x6]]  ;;  %s483_s7 = sld [smem:[#allocation2 + $0xd]] }
  0x19   :  { %v51_v15 = vmul.f32 %v50_v13, %v448_v0  ;;  %v54_v16 = vmul.f32 %v453_v1, %v53_v14  ;;  %v57_v17 = vstv %s455_s25  ;;  %v61_v18 = vstv %s457_s26  ;;  %s489_s8 = sld [smem:[#allocation2 + $0x14]]  ;;  %s491_s9 = sld [smem:[#allocation2 + $0x15]] }
  0x1a   :  { %v36_v19 = vadd.f32 %v35_v7, %v33_v11  ;;  %v44_v20 = vadd.f32 %v43_v12, %v40_v8  ;;  %v62_v21 = vmul.f32 %v61_v18, %v448_v0  ;;  %v64_v22 = vstv %s459_s27  ;;  %s495_s10 = sld [smem:[#allocation2 + $0x1b]]  ;;  %s497_s11 = sld [smem:[#allocation2 + $0x21]] }
  0x1b   :  { %v55_v23 = vadd.f32 %v54_v16, %v51_v15  ;;  %v65_v24 = vmul.f32 %v453_v1, %v64_v22  ;;  %v68_v25 = vstv %s461_s28  ;;  %v72_v26 = vstv %s463_s29  ;;  %s506_s12 = sld [smem:[#allocation2 + $0x27]]  ;;  %s508_s13 = sld [smem:[#allocation2 + $0x2d]] }
  0x1c   :  { %v502_v27 = vmax.f32 %v36_v19, 0.0  ;;  %v47_v28 = vadd.f32 %v46_v10, %v44_v20  ;;  %v73_v29 = vmul.f32 %v72_v26, %v448_v0  ;;  %v75_v30 = vstv %s465_s30  ;;  %s517_s14 = sld [smem:[#allocation2 + $0x33]]  ;;  %s522_s15 = sld [smem:[#allocation2 + $0x16]] }
  0x1d   :  { %v58_v31 = vadd.f32 %v57_v17, %v55_v23  ;;  %v66_v32 = vadd.f32 %v65_v24, %v62_v21  ;;  %v76_v33 = vmul.f32 %v453_v1, %v75_v30  ;;  %v79_v34 = vstv %s469_s1  ;;  %s524_s16 = sld [smem:[#allocation2 + $0x1c]]  ;;  %s530_s17 = sld [smem:[#allocation2 + $0x39]] }
  0x1e   :  { %v512_v35 = vmax.f32 %v47_v28, 0.0  ;;  %v83_v36 = vstv %s471_s3  ;;  %v86_v37 = vstv %s476_s4  ;;  %v90_v38 = vstv %s478_s5  ;;  %s532_s18 = sld [smem:[#allocation2 + $0x22]]  ;;  %s538_s0 = sld [smem:[#allocation2 + $0x28]] }
  0x1f   :  { %v519_v39 = vmax.f32 %v58_v31, 0.0  ;;  %v69_v40 = vadd.f32 %v68_v25, %v66_v32  ;;  %v77_v41 = vadd.f32 %v76_v33, %v73_v29  ;;  %v84_v42 = vmul.f32 %v83_v36, %v448_v0  ;;  %s543_s19 = sld [smem:[#allocation2 + $0x2e]]  ;;  %s545_s20 = sld [smem:[#allocation2 + $0x34]] }
  0x20   :  { %v87_v43 = vmul.f32 %v453_v1, %v86_v37  ;;  %v94_v44 = vstv %s481_s6  ;;  %v97_v45 = vstv %s483_s7  ;;  %v101_v46 = vstv %s489_s8  ;;  %s551_s21 = sld [smem:[#allocation2 + $0x3f]]  ;;  %s556_s22 = sld [smem:[#allocation2 + $0x3a]] }
  0x21   :  { %v534_v47 = vmax.f32 %v69_v40, 0.0  ;;  %v80_v48 = vadd.f32 %v79_v34, %v77_v41  ;;  %v95_v49 = vmul.f32 %v94_v44, %v448_v0  ;;  %v98_v50 = vmul.f32 %v453_v1, %v97_v45  ;;  %s558_s23 = sld [smem:[#allocation2 + $0x17]]  ;;  %s561_s24 = sld [smem:[#allocation2 + $0x1d]] }
  0x22   :  { %v88_v51 = vadd.f32 %v87_v43, %v84_v42  ;;  %v105_v52 = vstv %s491_s9  ;;  %v108_v53 = vstv %s495_s10  ;;  %v112_v54 = vstv %s497_s11  ;;  %s563_s25 = sld [smem:[#allocation2 + $0x23]]  ;;  %s569_s26 = sld [smem:[#allocation2 + $0x29]] }
  0x23   :  { %v547_v55 = vmax.f32 %v80_v48, 0.0  ;;  %v99_v56 = vadd.f32 %v98_v50, %v95_v49  ;;  %v106_v57 = vmul.f32 %v105_v52, %v502_v27  ;;  %v109_v58 = vmul.f32 %v108_v53, %v512_v35  ;;  %s575_s27 = sld [smem:[#allocation2 + $0x2f]]  ;;  %s581_s28 = sld [smem:[#allocation2 + $0x35]] }
  0x24   :  { %v91_v59 = vadd.f32 %v90_v38, %v88_v51  ;;  %v113_v60 = vmul.f32 %v112_v54, %v519_v39  ;;  %v116_v61 = vstv %s506_s12  ;;  %v120_v62 = vstv %s508_s13  ;;  %s586_s29 = sld [smem:[#allocation2 + $0x40]]  ;;  %s593_s1 = sld [smem:[#allocation2 + $0x3b]] }
  0x25   :  { %v102_v63 = vadd.f32 %v101_v46, %v99_v56  ;;  %v110_v0 = vadd.f32 %v109_v58, %v106_v57  ;;  %v117_v1 = vmul.f32 %v116_v61, %v534_v47  ;;  %v121_v3 = vmul.f32 %v120_v62, %v547_v55  ;;  %s588_s30 = sld [smem:[#allocation2 + $0x18]]  ;;  %s595_s3 = sld [smem:[#allocation2 + $0x1e]] }
  0x26   :  { %v565_v2 = vmax.f32 %v91_v59, 0.0  ;;  %v124_v4 = vstv %s517_s14  ;;  %v136_v7 = vstv %s522_s15  ;;  %v139_v8 = vstv %s524_s16  ;;  %s600_s4 = sld [smem:[#allocation2 + $0x24]]  ;;  %s602_s5 = sld [smem:[#allocation2 + $0x2a]] }
  0x27   :  { %v571_v5 = vmax.f32 %v102_v63, 0.0  ;;  %v114_v6 = vadd.f32 %v113_v60, %v110_v0  ;;  %v128_v9 = vstv %s530_s17  ;;  %v137_v10 = vmul.f32 %v136_v7, %v502_v27  ;;  %s607_s6 = sld [smem:[#allocation2 + $0x41]]  ;;  %s612_s7 = sld [smem:[#allocation2 + $0x30]] }
  0x28   :  { %v140_v11 = vmul.f32 %v139_v8, %v512_v35  ;;  %v143_v12 = vstv %s532_s18  ;;  %v125_v14 = vmul.f32 %v124_v4, %v565_v2  ;;  %v147_v16 = vstv %s538_s0  ;;  %s614_s8 = sld [smem:[#allocation2 + $0x36]]  ;;  %s621_s9 = sld [smem:[#allocation2 + $0x3c]] }
  0x29   :  { %v118_v13 = vadd.f32 %v117_v1, %v114_v6  ;;  %v144_v15 = vmul.f32 %v143_v12, %v519_v39  ;;  %v148_v18 = vmul.f32 %v147_v16, %v534_v47  ;;  %v151_v19 = vstv %s543_s19  ;;  %s623_s10 = sld [smem:[#allocation2 + $0x19]]  ;;  %s627_s11 = sld [smem:[#allocation2 + $0x1f]] }
  0x2a   :  { %v141_v17 = vadd.f32 %v140_v11, %v137_v10  ;;  %v155_v20 = vstv %s545_s20  ;;  %v129_v22 = vmul.f32 %v128_v9, %v571_v5  ;;  %v132_v23 = vstv %s551_s21  ;;  %s629_s12 = sld [smem:[#allocation2 + $0x25]]  ;;  %s636_s13 = sld [smem:[#allocation2 + $0x2b]] }
  0x2b   :  { %v122_v21 = vadd.f32 %v121_v3, %v118_v13  ;;  %v152_v24 = vmul.f32 %v151_v19, %v547_v55  ;;  %v156_v26 = vmul.f32 %v155_v20, %v565_v2  ;;  %v159_v28 = vstv %s556_s22  ;;  %s638_s14 = sld [smem:[#allocation2 + $0x31]]  ;;  %s646_s15 = sld [smem:[#allocation2 + $0x42]] }
  0x2c   :  { %v145_v25 = vadd.f32 %v144_v15, %v141_v17  ;;  %v167_v29 = vstv %s558_s23  ;;  %v170_v32 = vstv %s561_s24  ;;  %v174_v33 = vstv %s563_s25  ;;  %s648_s16 = sld [smem:[#allocation2 + $0x37]]  ;;  %s652_s17 = sld [smem:[#allocation2 + $0x3d]] }
  0x2d   :  { %v126_v30 = vadd.f32 %v125_v14, %v122_v21  ;;  %v168_v31 = vmul.f32 %v167_v29, %v502_v27  ;;  %v171_v36 = vmul.f32 %v170_v32, %v512_v35  ;;  %v175_v37 = vmul.f32 %v174_v33, %v519_v39  ;;  %s658_s18 = sld [smem:[#allocation2 + $0x1a]]  ;;  %s660_s0 = sld [smem:[#allocation2 + $0x20]] }
  0x2e   :  { %v149_v34 = vadd.f32 %v148_v18, %v145_v25  ;;  %v178_v38 = vstv %s569_s26  ;;  %v160_v41 = vmul.f32 %v159_v28, %v571_v5  ;;  %v182_v42 = vstv %s575_s27  ;;  %s664_s19 = sld [smem:[#allocation2 + $0x26]]  ;;  %s671_s20 = sld [smem:[#allocation2 + $0x2c]] }
  0x2f   :  { %v130_v40 = vadd.f32 %v129_v22, %v126_v30  ;;  %v172_v44 = vadd.f32 %v171_v36, %v168_v31  ;;  %v179_v45 = vmul.f32 %v178_v38, %v534_v47  ;;  %v186_v46 = vstv %s581_s28  ;;  %s673_s21 = sld [smem:[#allocation2 + $0x32]]  ;;  %s681_s22 = sld [smem:[#allocation2 + $0x43]] }
  0x30   :  { %v153_v43 = vadd.f32 %v152_v24, %v149_v34  ;;  %v163_v49 = vstv %s586_s29  ;;  %v183_v50 = vmul.f32 %v182_v42, %v547_v55  ;;  %v198_v51 = vstv %s588_s30  ;;  %s685_s23 = sld [smem:[#allocation2 + $0x38]]  ;;  %s687_s24 = sld [smem:[#allocation2 + $0x3e]] }
  0x31   :  { %v631_v48 = vadd.f32 %v132_v23, %v130_v40  ;;  %v176_v53 = vadd.f32 %v175_v37, %v172_v44  ;;  %v190_v54 = vstv %s593_s1  ;;  %v199_v56 = vmul.f32 %v198_v51, %v502_v27  ;;  %s693_s25 = sld [smem:[#allocation2 + $0x45]]  ;;  %s695_s26 = sld [smem:[#allocation2 + $0x46]] }
  0x32   :  { %v157_v52 = vadd.f32 %v156_v26, %v153_v43  ;;  %v187_v57 = vmul.f32 %v186_v46, %v565_v2  ;;  %v201_v58 = vstv %s595_s3  ;;  %v205_v59 = vstv %s600_s4  ;;  %s702_s27 = sld [smem:[#allocation2 + $0x47]]  ;;  %s704_s28 = sld [smem:[#allocation2 + $0x48]] }
  0x33   :  { %v209_v60 = vstv %s602_s5  ;;  %v180_v62 = vadd.f32 %v179_v45, %v176_v53  ;;  %v202_v63 = vmul.f32 %v201_v58, %v512_v35  ;;  %v206_v0 = vmul.f32 %v205_v59, %v519_v39  ;;  %s716_s29 = sld [smem:[#allocation2 + $0x49]]  ;;  %s395_s30 = sld [smem:[#allocation2 + $0x44]] }
  0x34   :  { %v161_v61 = vadd.f32 %v160_v41, %v157_v52  ;;  %v191_v1 = vmul.f32 %v190_v54, %v571_v5  ;;  %v194_v3 = vstv %s607_s6  ;;  %v213_v4 = vstv %s612_s7  ;;  %s401_s1 = sld [smem:[#allocation2 + $0x4a]]  ;;  %s402_s3 = sld [smem:[#allocation2 + $0x4b]] }
  0x35   :  { %v217_v6 = vstv %s614_s8  ;;  %v134_v7 = vmax.f32 %v631_v48, 0.0  ;;  %v184_v8 = vadd.f32 %v183_v50, %v180_v62  ;;  %v203_v9 = vadd.f32 %v202_v63, %v199_v56 }
  0x36   :  { %v210_v10 = vmul.f32 %v209_v60, %v534_v47  ;;  %v666_v11 = vadd.f32 %v163_v49, %v161_v61  ;;  %v214_v12 = vmul.f32 %v213_v4, %v547_v55  ;;  %v221_v13 = vstv %s621_s9 }
  0x37   :  { %v229_v14 = vstv %s623_s10  ;;  %v188_v15 = vadd.f32 %v187_v57, %v184_v8  ;;  %v207_v16 = vadd.f32 %v206_v0, %v203_v9  ;;  %v218_v17 = vmul.f32 %v217_v6, %v565_v2 }
  0x38   :  { %v230_v18 = vmul.f32 %v229_v14, %v502_v27  ;;  %v232_v19 = vstv %s627_s11  ;;  %v236_v20 = vstv %s629_s12  ;;  %v240_v21 = vstv %s636_s13 }
  0x39   :  { %v244_v22 = vstv %s638_s14  ;;  %v192_v23 = vadd.f32 %v191_v1, %v188_v15  ;;  %v211_v24 = vadd.f32 %v210_v10, %v207_v16  ;;  %v233_v25 = vmul.f32 %v232_v19, %v512_v35 }
  0x3a   :  { %v237_v26 = vmul.f32 %v236_v20, %v519_v39  ;;  %v165_v28 = vmax.f32 %v666_v11, 0.0  ;;  %v222_v29 = vmul.f32 %v221_v13, %v571_v5  ;;  %v225_v30 = vstv %s646_s15 }
  0x3b   :  { %v248_v31 = vstv %s648_s16  ;;  %v215_v32 = vadd.f32 %v214_v12, %v211_v24  ;;  %v234_v33 = vadd.f32 %v233_v25, %v230_v18  ;;  %v241_v34 = vmul.f32 %v240_v21, %v534_v47 }
  0x3c   :  { %v245_v36 = vmul.f32 %v244_v22, %v547_v55  ;;  %v195_v37 = vadd.f32 %v194_v3, %v192_v23  ;;  %v252_v38 = vstv %s652_s17  ;;  %v260_v40 = vstv %s658_s18 }
  0x3d   :  { %v263_v41 = vstv %s660_s0  ;;  %v219_v42 = vadd.f32 %v218_v17, %v215_v32  ;;  %v238_v43 = vadd.f32 %v237_v26, %v234_v33  ;;  %v249_v44 = vmul.f32 %v248_v31, %v565_v2 }
  0x3e   :  { %v261_v45 = vmul.f32 %v260_v40, %v502_v27  ;;  %v264_v46 = vmul.f32 %v263_v41, %v512_v35  ;;  %v267_v49 = vstv %s664_s19  ;;  %v271_v50 = vstv %s671_s20 }
  0x3f   :  { %v275_v51 = vstv %s673_s21  ;;  %v223_v52 = vadd.f32 %v222_v29, %v219_v42  ;;  %v242_v53 = vadd.f32 %v241_v34, %v238_v43  ;;  %v253_v54 = vmul.f32 %v252_v38, %v571_v5 }
  0x40   :  { %v268_v56 = vmul.f32 %v267_v49, %v519_v39  ;;  %v196_v57 = vmax.f32 %v195_v37, 0.0  ;;  %v256_v58 = vstv %s681_s22  ;;  %v265_v59 = vadd.f32 %v264_v46, %v261_v45 }
  0x41   :  { %v272_v27 = vmul.f32 %v271_v50, %v534_v47  ;;  %v226_v35 = vadd.f32 %v225_v30, %v223_v52  ;;  %v246_v60 = vadd.f32 %v245_v36, %v242_v53  ;;  %v276_v61 = vmul.f32 %v275_v51, %v547_v55 }
  0x42   :  { %v279_v62 = vstv %s685_s23  ;;  %v269_v63 = vadd.f32 %v268_v56, %v265_v59  ;;  %v283_v0 = vstv %s687_s24  ;;  %v291_v1 = vstv %s693_s25 }
  0x43   :  { %v294_v3 = vstv %s695_s26  ;;  %v227_v39 = vmax.f32 %v226_v35, 0.0  ;;  %v250_v4 = vadd.f32 %v249_v44, %v246_v60  ;;  %v292_v6 = vmul.f32 %v291_v1, %v134_v7 }
  0x44   :  { %v295_v47 = vmul.f32 %v294_v3, %v165_v28  ;;  %v273_v8 = vadd.f32 %v272_v27, %v269_v63  ;;  %v280_v9 = vmul.f32 %v279_v62, %v565_v2  ;;  %v298_v10 = vstv %s702_s27 }
  0x45   :  { %v302_v11 = vstv %s704_s28  ;;  %v254_v12 = vadd.f32 %v253_v54, %v250_v4  ;;  %v299_v13 = vmul.f32 %v298_v10, %v196_v57  ;;  %v284_v15 = vmul.f32 %v283_v0, %v571_v5 }
  0x46   :  { %v296_v55 = vadd.f32 %v295_v47, %v292_v6  ;;  %v277_v14 = vadd.f32 %v276_v61, %v273_v8  ;;  %v303_v16 = vmul.f32 %v302_v11, %v227_v39  ;;  %v306_v48 = vstv %s716_s29 }
  0x47   :  { %v257_v17 = vadd.f32 %v256_v58, %v254_v12  ;;  %v287_v20 = vstv %s395_s30  ;;  %v310_v24 = vstv %s401_s1  ;;  %v314_v29 = vstv %s402_s3 }
  0x48   :  { %v300_v18 = vadd.f32 %v299_v13, %v296_v55  ;;  %v281_v19 = vadd.f32 %v280_v9, %v277_v14 }
  0x49   :  { %v258_v7 = vmax.f32 %v257_v17, 0.0 }
  0x4a   :  { %v285_v21 = vadd.f32 %v284_v15, %v281_v19  ;;  %v304_v22 = vadd.f32 %v303_v16, %v300_v18 }
  0x4b   :  { %v307_v2 = vmul.f32 %v306_v48, %v258_v7 }
  0x4c   :  { %v288_v23 = vadd.f32 %v287_v20, %v285_v21 }
  0x4d   :  { %v308_v26 = vadd.f32 %v307_v2, %v304_v22 }
  0x4e   :  { %v289_v25 = vmax.f32 %v288_v23, 0.0 }
  0x50   :  { %v311_v28 = vmul.f32 %v310_v24, %v289_v25 }
  0x52   :  { %v312_v30 = vadd.f32 %v311_v28, %v308_v26 }
  0x54   :  { %v315_v31 = vadd.f32 %v314_v29, %v312_v30 }
  0x56   :  { %v316_v5 = vsub.f32 0.0, %v315_v31 }
  0x58   :  { %v317_v32 = vmul.f32 1.442695, %v316_v5 }
  0x5a   :  { %404 = vpow2.f32 %v317_v32 }
  0x64   :  { %v405_v33 = vpop.eup %404 }
  0x65   :  { %v319_v34 = vadd.f32 1.0, %v405_v33 }
  0x67   :  { %406 = vrcp.f32 %v319_v34 }
  0x71   :  { %v407_v36 = vpop.eup %406 }
  0x72   :  { %321 = vst [vmem:[%s735_s2] sm:$0xff] %v407_v36 }
  0x73   :  { %326 = vsyncpa [#allocation3], 1 }

</bundles_post_ra>
